<compile_context>
chip_gen: v6e
topology: v6e:2x2x1
jax: 0.10.0
libtpu: 0.0.40
codegen_flags: <defaults>
</compile_context>

<pallas_src>
import numpy as np
import jax
import jax.numpy as jnp
from jax import lax
from jax.experimental import pallas as pl
from jax.experimental.pallas import tpu as pltpu


def _round_up(v, m):
    return ((v + m - 1) // m) * m


def strided_slice(x, begin, end, stride):
    """Equivalent of x[b0:e0:s0, b1:e1:s1, b2:e2:s2, b3:e3:s3] for 4-D x."""
    assert x.ndim == 4 and len(begin) == len(end) == len(stride) == 4
    N, C, H, W = x.shape

    # TODO(synk): negative strides / negative begin-end (valid in PyTorch slicing)
    # and empty output ranges are not handled; only positive, non-empty slices.
    assert all(s > 0 for s in stride) and all(b >= 0 for b in begin)

    dims = (N, C, H, W)
    idx = [list(range(begin[d], min(end[d], dims[d]), stride[d])) for d in range(4)]
    n_out, c_out, h_out, w_out = (len(v) for v in idx)
    assert n_out > 0 and c_out > 0 and h_out > 0 and w_out > 0

    b0, s0 = begin[0], stride[0]
    b1, s1 = begin[1], stride[1]
    b2, s2 = begin[2], stride[2]
    b3, s3 = begin[3], stride[3]

    # Fetch only the H/W prefix the slice touches. Block dims on the last two axes
    # must be multiples of (8, 128) or equal the full dim.
    h_needed = b2 + (h_out - 1) * s2 + 1
    h_blk = _round_up(h_needed, 8)
    if h_blk >= H:
        h_blk = H
    w_needed = b3 + (w_out - 1) * s3 + 1
    w_blk = _round_up(w_needed, 128)
    if w_blk >= W:
        w_blk = W

    if s3 > 1 and not jnp.issubdtype(x.dtype, jnp.floating):
        # TODO(synk): integer/bool dtypes need a non-MXU lane-selection path
        # (v7x MXU has no integer mode); only float dtypes are supported here.
        raise NotImplementedError("strided W slicing is implemented for float dtypes")

    def kernel(x_ref, o_ref):
        # x_ref: (h_blk, w_blk) slab of the (n, c) pair selected by the index_map.
        # o_ref: (h_out, w_out)
        h_sl = pl.ds(b2, h_out, stride=s2) if s2 > 1 else pl.ds(b2, h_out)
        if s3 == 1:
            # Pure strided copy: sublane-strided read + contiguous lane slice.
            # No MXU, exact for every dtype.
            o_ref[...] = x_ref[h_sl, pl.ds(b3, w_out)]
        else:
            xh = x_ref[h_sl, :]  # (h_out, w_blk)
            # 0/1 lane-selection matrix generated in-kernel (VPU iota + compare).
            w_pos = lax.broadcasted_iota(jnp.int32, (w_blk, w_out), 0)
            w_tgt = lax.broadcasted_iota(jnp.int32, (w_blk, w_out), 1) * s3 + b3
            sel = (w_pos == w_tgt).astype(xh.dtype)
            # HIGHEST precision keeps the selection matmul bit-exact for f32/bf16
            # (default TPU dot precision truncates operands to bf16 on the MXU).
            out = jnp.dot(xh, sel,
                          precision=lax.Precision.HIGHEST,
                          preferred_element_type=jnp.float32)
            o_ref[...] = out.astype(o_ref.dtype)

    itemsize = x.dtype.itemsize
    in_block_bytes = h_blk * w_blk * itemsize
    out_block_bytes = h_out * w_out * itemsize
    flops = 0 if s3 == 1 else 2 * n_out * c_out * h_out * w_blk * w_out
    cost = pl.CostEstimate(
        flops=flops,
        transcendentals=0,
        bytes_accessed=n_out * c_out * (in_block_bytes + out_block_bytes),
    )
    # Double-buffered input + output blocks, plus slack; cap well under v7x's 64 MiB.
    vmem_limit = min(48 * 1024 * 1024,
                     max(8 * 1024 * 1024,
                         2 * in_block_bytes + 2 * out_block_bytes + (2 << 20)))

    out = pl.pallas_call(
        kernel,
        out_shape=jax.ShapeDtypeStruct((n_out, c_out, h_out, w_out), x.dtype),
        grid=(n_out, c_out),
        in_specs=[
            # Size-1 (squeezed) blocks along N and C: block index == element index,
            # so begin + i*stride in the index_map resolves the N / C strides and
            # dropped batches/channels are never DMA'd.
            pl.BlockSpec((None, None, h_blk, w_blk),
                         lambda i, j: (b0 + i * s0, b1 + j * s1, 0, 0)),
        ],
        out_specs=pl.BlockSpec((None, None, h_out, w_out),
                               lambda i, j: (i, j, 0, 0)),
        compiler_params=pltpu.CompilerParams(
            dimension_semantics=("parallel", "parallel"),
            vmem_limit_bytes=vmem_limit,
        ),
        cost_estimate=cost,
    )(x)
    return out


if __name__ == "__main__":
    # Small deterministic example (NCHW).
    key = jax.random.PRNGKey(0)
    x = jax.random.normal(key, (2, 4, 16, 16), dtype=jnp.float32)

    # net_strided_slice(begin, end, stride) configuration:
    begin = [0, 1, 2, 1]
    end = [2, 4, 14, 15]
    stride = [1, 2, 3, 2]

    out = strided_slice(x, begin, end, stride)
    out = jax.block_until_ready(out)

    # Pure-JAX reference (same semantics as torch's input[self.key]).
    ref = x[begin[0]:end[0]:stride[0],
            begin[1]:end[1]:stride[1],
            begin[2]:end[2]:stride[2],
            begin[3]:end[3]:stride[3]]

    assert out.shape == ref.shape, (out.shape, ref.shape)
    np.testing.assert_allclose(np.asarray(out), np.asarray(ref), rtol=0, atol=0)
    print("KERNEL_OK")
</pallas_src>

<mosaic_0001>
module attributes {stable_mosaic.version = 11 : i64} {
  func.func @kernel(%arg0: i32, %arg1: i32, %arg2: memref<1x1x16x16xf32, #tpu.memory_space<vmem>>, %arg3: memref<1x1x4x7xf32, #tpu.memory_space<vmem>>) attributes {dimension_semantics = [#tpu.dimension_semantics<parallel>, #tpu.dimension_semantics<parallel>], iteration_bounds = array<i64: 2, 2>, scalar_prefetch = 0 : i64, scratch_operands = 0 : i64, tpu.core_type = #tpu.core_type<tc>, window_params = [{transform_indices = @transform_0, window_bounds = array<i64: 1, 1, 16, 16>}, {transform_indices = @transform_1, window_bounds = array<i64: 1, 1, 4, 7>}]} {
    %c0 = arith.constant 0 : index
    %c0_0 = arith.constant 0 : index
    %c2 = arith.constant 2 : index
    %c0_1 = arith.constant 0 : index
    %0 = tpu.strided_load %arg2[%c0, %c0_0, %c2, %c0_1] {strides = array<i32: 1, 1, 3, 1>} : memref<1x1x16x16xf32, #tpu.memory_space<vmem>>, vector<1x1x4x16xf32>
    %1 = vector.shape_cast %0 : vector<1x1x4x16xf32> to vector<4x16xf32>
    %2 = tpu.iota {dimensions = array<i32: 0>} : vector<16x7xi32>
    %3 = tpu.iota {dimensions = array<i32: 1>} : vector<16x7xi32>
    %c2_i32 = arith.constant 2 : i32
    %4 = vector.broadcast %c2_i32 : i32 to vector<16x7xi32>
    %5 = arith.muli %3, %4 : vector<16x7xi32>
    %c1_i32 = arith.constant 1 : i32
    %6 = vector.broadcast %c1_i32 : i32 to vector<16x7xi32>
    %7 = arith.addi %5, %6 : vector<16x7xi32>
    %8 = arith.cmpi eq, %2, %7 : vector<16x7xi32>
    %9 = arith.extui %8 : vector<16x7xi1> to vector<16x7xi32>
    %10 = arith.sitofp %9 : vector<16x7xi32> to vector<16x7xf32>
    %cst = arith.constant dense<0.000000e+00> : vector<4x7xf32>
    %11 = tpu.matmul %1, %10, %cst {dimension_numbers = #tpu.dot_dimension_numbers<[1], [0], [0], [1], [0, 0, 1, 1], [], []>, precision = #tpu.contract_precision<fp32>} : vector<4x16xf32>, vector<16x7xf32>, vector<4x7xf32> -> vector<4x7xf32>
    %c0_2 = arith.constant 0 : index
    %c0_3 = arith.constant 0 : index
    %c0_4 = arith.constant 0 : index
    %c0_5 = arith.constant 0 : index
    %12 = vector.load %arg3[%c0_2, %c0_3, %c0_4, %c0_5] : memref<1x1x4x7xf32, #tpu.memory_space<vmem>>, vector<1x1x4x7xf32>
    %13 = vector.shape_cast %12 : vector<1x1x4x7xf32> to vector<4x7xf32>
    %14 = vector.shape_cast %11 : vector<4x7xf32> to vector<1x1x4x7xf32>
    tpu.vector_store %arg3[%c0_2, %c0_3, %c0_4, %c0_5], %14 {strides = array<i32>} : memref<1x1x4x7xf32, #tpu.memory_space<vmem>>, vector<1x1x4x7xf32>,
    return
  }
  func.func @transform_0(%arg0: i32, %arg1: i32) -> (i32, i32, i32, i32) {
    %c1_i32 = arith.constant 1 : i32
    %0 = arith.muli %arg0, %c1_i32 : i32
    %c0_i32 = arith.constant 0 : i32
    %1 = arith.addi %c0_i32, %0 : i32
    %c2_i32 = arith.constant 2 : i32
    %2 = arith.muli %arg1, %c2_i32 : i32
    %c1_i32_0 = arith.constant 1 : i32
    %3 = arith.addi %c1_i32_0, %2 : i32
    %c0_i32_1 = arith.constant 0 : i32
    %c0_i32_2 = arith.constant 0 : i32
    %c0_i32_3 = arith.constant 0 : i32
    return %1, %3, %c0_i32_1, %c0_i32_2 : i32, i32, i32, i32
  }
  func.func @transform_1(%arg0: i32, %arg1: i32) -> (i32, i32, i32, i32) {
    %c0_i32 = arith.constant 0 : i32
    %c0_i32_0 = arith.constant 0 : i32
    %c0_i32_1 = arith.constant 0 : i32
    return %arg0, %arg1, %c0_i32, %c0_i32_0 : i32, i32, i32, i32
  }
}

</mosaic_0001>

<bundles_post_ra>
// kernel: tpu_custom_call.1
= control target key start
LH: loop header
LB: loop body
LE: loop exit
PB: predicated region body
PF: predicated region fallthrough
CT: control target
= control target key end

     0   :  { %6 = vsyncpa [#allocation3], 0  ;;  %s1319_s0 = inlined_call_operand.hbm [shape: f32[2,4,16,16], index: 0, kind: input, shape index: {}]   ;;  %s1320_s1 = inlined_call_operand.hbm [shape: f32[2,2,4,7], index: 1, kind: output, shape index: {}]  }
   0x1   :  { %8 = vsyncpa [#allocation3 + $0x1], 0 }
   0x2   :  { %9 = vsyncpa [#allocation4], 0 }
   0x3   :  { %11 = vsyncpa [#allocation4 + $0x1], 0  ;;  %s1109_s6 = smov 0   ;;  %s1111_s7 = smov 0  }
   0x4   :  { %s1113_s8 = smov 0   ;;  %s1115_s9 = smov 0  }
   0x5   :  { %s1117_s10 = smov 0   ;;  %s1119_s11 = smov 0  }
   0x6   :  { %s1121_s12 = smov 0   ;;  %s1123_s13 = smov 0  }
   0x7   :  { %s1125_s14 = smov 0   ;;  %s1127_s15 = smov 0  }
   0x8   :  { %s1129_s16 = smov 0  }
   0x9 LB: > { %s745_s17 = sadd.s32 4294967295, %s1090_s16   ;;  %s746_s18 = sadd.s32 4294967294, %s1090_s16   ;;  %s1090_s16 = sphi %s1129_s16, %s17_s16   ;;  %s1086_s15 = sphi %s1127_s15, %s1343_s15   ;;  %s1082_s14 = sphi %s1125_s14, %s1342_s14   ;;  %s1078_s13 = sphi %s1123_s13, %s1341_s13   ;;  %s1074_s12 = sphi %s1121_s12, %s1340_s12   ;;  %s1070_s11 = sphi %s1119_s11, %s1339_s11   ;;  %s1066_s10 = sphi %s1117_s10, %s1338_s10   ;;  %s1062_s9 = sphi %s1115_s9, %s1337_s9   ;;  %s1058_s8 = sphi %s1113_s8, %s1336_s8   ;;  %s1054_s7 = sphi %s1111_s7, %s1335_s7   ;;  %s1050_s6 = sphi %s1109_s6, %s1334_s6  }
   0xa   : > { %s26_s19 = sadd.s32 1, %s1082_s14  ;;  %s29_s20 = sadd.s32 1, %s1086_s15 }
   0xb   : > { %p27_p0 = scmp.ge.s32.totalorder %s26_s19, 2  ;;  %s747_s21 = sshll.u32 %s1082_s14, 1 }
   0xc   : > { %s34_s22 = sadd.s32 1, %s747_s21  ;;  %s42_s23 = sadd.s32 1, %s1070_s11 }
   0xd   : > { %s1345_s19 = smov (%p27_p0, %s26_s19), 0  ;;  %s1347_s20 = smov (!%p27_p0, %s29_s20), %s1086_s15 }
   0xe   : > { %1323 = sst [smem:[#allocation8_spill]] %s1345_s19  ;;  %s748_s24 = sshll.u32 %s1345_s19, 1 }
   0xf   : > { %p49_p1 = scmp.ne.s32.totalorder %s1070_s11, %s1066_s10  ;;  %p31_p2 = scmp.ge.s32.totalorder %s1347_s20, 2 }
  0x10   : > { %s36_s25 = sadd.s32 1, %s748_s24  ;;  %p50_p3 = scmp.eq.s32.totalorder %s1090_s16, 0 }
  0x11   : > { %s38_s26 = ssub.s32 %s34_s22, %s36_s25  ;;  %s1349_s20 = smov (%p31_p2, %s1347_s20), 0 }
  0x12   : > { %1324 = sst [smem:[#allocation9_spill]] %s1349_s20  ;;  %p1179_p4 = por %p50_p3, %p49_p1 }
  0x13   : > { %p55_p5 = scmp.ne.s32.totalorder %s1066_s10, %s1062_s9  ;;  %s37_s28 = ssub.s32 %s1086_s15, %s1349_s20 }
  0x14   : > { %p56_p6 = scmp.eq.s32.totalorder %s745_s17, 0  ;;  %s39_s29 = sor.u32 %s38_s26, %s37_s28 }
  0x15   : > { %s66_s30 = ssub.s32 %s1082_s14, %s1345_s19  ;;  %p40_p7 = scmp.eq.s32.totalorder %s39_s29, 0 }
  0x16   : > { %p1191_p8 = por %p56_p6, %p55_p5  ;;  %s67_s3 = sor.u32 %s66_s30, %s37_s28 }
  0x17   : > { %s70_s4 = sadd.s32 1, %s1058_s8  ;;  %p68_p9 = scmp.eq.s32.totalorder %s67_s3, 0 }
  0x18   : > { %s1197_s5 = scalar_select %p40_p7, %s1070_s11, %s42_s23  }
  0x19   : > { %p80_p10 = scmp.ne.s32.totalorder %s1058_s8, %s1054_s7  ;;  %p81_p11 = scmp.eq.s32.totalorder %s745_s17, 3 }
  0x1a   : > { %1327 = sst [smem:[#allocation10_spill]] %s1197_s5  ;;  %p86_p12 = scmp.ne.s32.totalorder %s1054_s7, %s1050_s6 }
  0x1b   : > { %s1206_s9 = scalar_select %p68_p9, %s1058_s8, %s70_s4  }
  0x1c   : > { %p1208_p13 = por %p81_p11, %p80_p10  ;;  %p87_p0 = scmp.eq.s32.totalorder %s746_s18, 3 }
  0x1d   : > { %p846_p1 = scmp.lt.s32.totalorder %s1090_s16, 4  ;;  %s107_s23 = sand.u32 1, %s1070_s11  }
  0x1e   : > { %p1215_p2 = por %p87_p0, %p86_p12  ;;  %s751_s24 = sshll.u32 %s107_s23, 4 }
  0x1f   : > { %s773_s25 = sshll.u32 %s1082_s14, 2  ;;  %s754_s17 = sshll.u32 %s1086_s15, 3 }
  0x20   : > { %s111_s26 = scalar_lea.vmem [#allocation2], %s751_s24  ;;  %s687_s29 = sadd.s32 %s773_s25, %s754_s17 }
  0x21   : > { %s122_s28 = sshll.u32 %s111_s26, 4  ;;  %s755_s30 = sshll.u32 %s687_s29, 7  ;;  %s123_s28 = int_to_ptr.vmem [resolvable:$true] %s122_s28 }
  0x22   : > { %p1224_p3 = pnand %p846_p1, %p1179_p4  ;;  %s689_s20 = scalar_lea.hbm %s1319_s0, %s755_s30 }
  0x23   : > { %s690_s19 = scalar_lea.hbm %s689_s20, 256  ;;  %p756_p5 = scmp.ge.s32.totalorder %s1090_s16, 1 }
  0x24   : > { %s108_s5 = scalar_lea.sflag [#allocation3], %s107_s23  ;;  %p943_p6 = pneg %p1224_p3 }
  0x25   : > { %s954_s24 = scalar_lea.vmem %s123_s28, 256  ;;  %s1092_s25 = smov [#allocation2]  }
  0x26   : > { %p955_p7 = scmp.ne.s32.totalorder %s123_s28, %s954_s24  ;;  %s959_s27 = sshll.u32 %s1092_s25, 4  ;;  %s960_s27 = int_to_ptr.vmem [resolvable:$false] %s959_s27 }
  0x27   : > { %s961_s17 = scalar_lea.vmem %s960_s27, 512  ;;  %p962_p4 = scmp.lt.s32.totalorder %s123_s28, %s960_s27 }
  0x28   : > { %p957_p9 = pnand %p955_p7, %p943_p6  ;;  %p963_p11 = scmp.lt.s32.totalorder %s961_s17, %s954_s24 }
  0x2a   : > { %p958_p10 = pneg %p957_p9  ;;  %p964_p12 = por %p963_p11, %p962_p4 }
  0x2c   : > { %p965_p0 = pnand %p964_p12, %p958_p10 }
  0x2e   : > { %968 = shalt.err (!%p965_p0)
}
  0x2f   : > { %s1093_s26 = smov 128   ;;  %s1094_s20 = smov 8  }
  0x30   : > { %841 = dma.hbm_to_vmem [thread:$0]  (!%p1224_p3), %s690_s19, 256, %s123_s28, %s108_s5, %s1093_s26, %s1093_s26, %s1094_s20  }
  0x31   : > { %p130_p1 = scmp.lt.s32.totalorder %s1090_s16, 5 }
  0x33   : > { %p131_p6 = pnand %p756_p5, %p130_p1 }
  0x34   : > { %s136_s23 = sand.u32 (!%p131_p6), 1, %s1066_s10  }
  0x35   : > { %134 = sbr.rel (%p131_p6) target bundleno = 296 (0x128), region = 24  ;;  %s757_s29 = sshll.u32 (!%p131_p6), %s136_s23, 4 }
  0x36   : > { %s137_s30 = scalar_lea.sflag (!%p131_p6), [#allocation3], %s136_s23  ;;  %s140_s18 = scalar_lea.vmem (!%p131_p6), [#allocation2], %s757_s29 }
  0x3a   : > { %1041 = dma.done.wait (%p1191_p8), %s137_s30, 256  }
  0x3b   : > { %1043 = vsyncadd (%p1191_p8), %s137_s30, 4294967040  ;;  %v163_v0 = vlaneseq  ;;  %v1095_v1 = vmov 0.0   ;;  %vm1096_vm0 = vmmov 0   ;;  %vm176_vm1 = vcmask 130048   ;;  %s156_s19 = sand.u32 1, %s1054_s7   ;;  %s769_s5 = sshll.u32 %s1078_s13, 1 }
  0x3c   : > { %792 = vmatprep.subr.mxu0 %v1095_v1  ;;  %799 = vmatprep.subr.mxu1 %v1095_v1  ;;  %v759_v7 = vld [vmem:[%s140_s18 + $0x2] ss:$3 sm:$0xf]  ;;  %v1097_v9 = vmov 1.0   ;;  %s758_s2 = sshll.u32 %s156_s19, 2  ;;  %s653_s28 = sadd.s32 %s1074_s12, %s769_s5  ;;  %vm639_vm4 = vcmask 52224  }
  0x3d   : > { %v164_v2 = vshrl.u32 %v163_v0, 7  ;;  %v167_v3 = vand.u32 127, %v163_v0  ;;  %796 = vmatprep.mubr.msk.f32.mxu0 %vm1096_vm0, %v1095_v1  ;;  %803 = vmatprep.mubr.msk.f32.mxu1 %vm1096_vm0, %v1095_v1  ;;  %v178_v8 = vsel %vm176_vm1, %v759_v7, 0  ;;  %s770_s3 = sshll.u32 %s653_s28, 6  ;;  %s158_s4 = scalar_lea.vmem [#allocation5], %s758_s2 }
  0x3e   : > { %v247_v12 = vand.u32 4294901760, %v178_v8  ;;  %s657_s24 = sshll.u32 %s158_s4, 4  ;;  %s1264_s13 = scalar_lea.hbm %s1320_s1, %s770_s3  ;;  %s658_s24 = int_to_ptr.vmem [resolvable:$true] %s657_s24 }
  0x3f   : > { %v165_v4 = vadd.s32 8, %v164_v2  ;;  %v168_v5 = vmul.u32 2, %v167_v3  ;;  %s642_s12 = scalar_lea.sflag [#allocation4], %s156_s19  ;;  %s970_s17 = scalar_lea.vmem %s658_s24, 64 }
  0x40   : > { %v248_v15 = vsub.f32 %v178_v8, %v247_v12  ;;  %p971_p8 = scmp.ne.s32.totalorder %s658_s24, %s970_s17  ;;  %s1098_s26 = smov [#allocation5]  }
  0x41   : > { %v169_v6 = vadd.s32 1, %v168_v5  ;;  %s974_s20 = sshll.u32 %s1098_s26, 4  ;;  %s975_s20 = int_to_ptr.vmem [resolvable:$false] %s974_s20 }
  0x42   : > { %v249_v18 = vand.u32 4294901760, %v248_v15  ;;  %p972_p3 = pnand %p971_p8, %p1208_p13  ;;  %s976_s23 = scalar_lea.vmem %s975_s20, 128 }
  0x43   : > { %vm171_vm2 = vcmp.eq.s32.totalorder %v165_v4, %v169_v6  ;;  %vm170_vm3 = vcmp.eq.s32.totalorder %v164_v2, %v169_v6  ;;  %p977_p7 = scmp.lt.s32.totalorder %s658_s24, %s975_s20  ;;  %p978_p9 = scmp.lt.s32.totalorder %s976_s23, %s970_s17 }
  0x44   : > { %793 = vmatpush3.msk.msra.mxu0 %vm171_vm2, %v1097_v9  ;;  %v760_v10 = vsel %vm170_vm3, 1.0, %v1095_v1  ;;  %v761_v11 = vsel %vm171_vm2, 1.0, %v1095_v1  ;;  %v250_v21 = vsub.f32 %v248_v15, %v249_v18  ;;  %p973_p5 = pneg %p972_p3 }
  0x45   : > { %794 = vmatprep.subr.mxu0 %v1095_v1  ;;  %v294_v13 = vsub.f32 %v760_v10, %v760_v10  ;;  %v287_v14 = vsub.f32 %v761_v11, %v761_v11  ;;  %p979_p10 = por %p978_p9, %p977_p7 }
  0x46   : > { %795 = vmatpush3.msk.msra.mxu0 %vm170_vm3, %v1097_v9  ;;  %v251_v24 = vand.u32 4294901760, %v250_v21 }
  0x47   : > { %v288_v16 = vand.u32 4294901760, %v287_v14  ;;  %806 = vmatprep.subr.mxu0 %v1095_v1  ;;  %v295_v17 = vand.u32 4294901760, %v294_v13  ;;  %p980_p4 = pnand %p979_p10, %p973_p5 }
  0x48   : > { %797 = vmatmul.mubr.f32.vlgmr.msra.gmra.mxu0 %v251_v24 }
  0x49   : > { %v289_v19 = vsub.f32 %v287_v14, %v288_v16  ;;  %v296_v20 = vsub.f32 %v294_v13, %v295_v17  ;;  %807 = vmatpush3.msra.mxu0 %v287_v14  ;;  %810 = vmatprep.mubr.msk.f32.mxu0 %vm1096_vm0, %v1095_v1 }
  0x4a   : > { %808 = vmatprep.subr.mxu0 %v1095_v1 }
  0x4b   : > { %v290_v22 = vand.u32 4294901760, %v289_v19  ;;  %v297_v23 = vand.u32 4294901760, %v296_v20  ;;  %809 = vmatpush3.msra.mxu0 %v294_v13 }
  0x4c   : > { %811 = vmatmul.mubr.f32.vlgmr.msra.gmra.mxu0 %v248_v15  ;;  %820 = vmatprep.subr.mxu0 %v1095_v1 }
  0x4d   : > { %800 = vmatpush3.msra.mxu1 %v290_v22  ;;  %821 = vmatpush3.msra.mxu0 %v288_v16 }
  0x4e   : > { %801 = vmatprep.subr.mxu1 %v1095_v1  ;;  %822 = vmatprep.subr.mxu0 %v1095_v1 }
  0x4f   : > { %802 = vmatpush3.msra.mxu1 %v297_v23  ;;  %823 = vmatpush3.msra.mxu0 %v295_v17 }
  0x50   : > { %804 = vmatmul.mubr.f32.vlgmr.msra.gmra.mxu1 %v247_v12  ;;  %813 = vmatprep.subr.mxu1 %v1095_v1 }
  0x51   : > { %814 = vmatpush3.msk.msra.mxu1 %vm171_vm2, %v1097_v9  ;;  %817 = vmatprep.mubr.msk.f32.mxu1 %vm1096_vm0, %v1095_v1 }
  0x52   : > { %815 = vmatprep.subr.mxu1 %v1095_v1  ;;  %824 = vmatprep.mubr.msk.f32.mxu0 %vm1096_vm0, %v1095_v1 }
  0x53   : > { %816 = vmatpush3.msk.msra.mxu1 %vm170_vm3, %v1097_v9  ;;  %825 = vmatmul.mubr.f32.vlgmr.msra.gmra.mxu0 %v247_v12 }
  0x54   : > { %818 = vmatmul.mubr.f32.vlgmr.msra.gmra.mxu1 %v249_v18  ;;  %827 = vmatprep.subr.mxu1 %v1095_v1 }
  0x55   : > { %828 = vmatpush3.msk.msra.mxu1 %vm171_vm2, %v1097_v9  ;;  %831 = vmatprep.mubr.msk.f32.mxu1 %vm1096_vm0, %v1095_v1 }
  0x56   : > { %829 = vmatprep.subr.mxu1 %v1095_v1 }
  0x57   : > { %830 = vmatpush3.msk.msra.mxu1 %vm170_vm3, %v1097_v9 }
  0x58   : > { %832 = vmatmul.mubr.f32.vlgmr.msra.gmra.mxu1 %v247_v12 }
 0x108   : > { %v253_v25 = vpop.f32.mrf.mxu0 }
 0x10a   : > { %v798_v26 = vpop.f32.mrf.mxu0 }
 0x10c   : > { %v410_v30 = vpop.f32.mrf.mxu0 }
 0x10e   : > { %v812_v32 = vpop.f32.mrf.mxu0 }
 0x110   : > { %v334_v27 = vpop.f32.mrf.mxu1 }
 0x111   : > { %v335_v28 = vadd.f32 %v334_v27, %v253_v25 }
 0x112   : > { %v805_v29 = vpop.f32.mrf.mxu1 }
 0x113   : > { %v411_v31 = vadd.f32 %v410_v30, %v335_v28  ;;  %v562_v36 = vpop.f32.mrf.mxu0 }
 0x114   : > { %v485_v33 = vpop.f32.mrf.mxu1 }
 0x115   : > { %v486_v34 = vadd.f32 %v485_v33, %v411_v31  ;;  %v826_v38 = vpop.f32.mrf.mxu0 }
 0x116   : > { %v819_v35 = vpop.f32.mrf.mxu1 }
 0x117   : > { %v563_v37 = vadd.f32 %v562_v36, %v486_v34 }
 0x118   : > { %v635_v39 = vpop.f32.mrf.mxu1 }
 0x119   : > { %v636_v40 = vadd.f32 %v635_v39, %v563_v37 }
 0x11a   : > { %v833_v41 = vpop.f32.mrf.mxu1 }
 0x11b   : > { %640 = vst.msk [vmem:[%s158_s4] sm:$0xf] %vm639_vm4, %v636_v40 }
 0x11c   : > { %983 = shalt.err (!%p980_p4)
}
 0x11d   : > { %s984_s29 = scalar_lea.hbm %s1264_s13, 64  ;;  %s988_s19 = scalar_lea.hbm %s1320_s1, 256 }
 0x11e   : > { %p985_p11 = scmp.ne.s32.totalorder %s1264_s13, %s984_s29  ;;  %p989_p1 = scmp.lt.s32.totalorder %s1264_s13, %s1320_s1 }
 0x11f   : > { %p990_p6 = scmp.lt.s32.totalorder %s988_s19, %s984_s29 }
 0x120   : > { %p986_p12 = pnand %p985_p11, %p1208_p13 }
 0x121   : > { %p991_p8 = por %p990_p6, %p989_p1 }
 0x122   : > { %p987_p0 = pneg %p986_p12 }
 0x124   : > { %p992_p3 = pnand %p991_p8, %p987_p0 }
 0x126   : > { %995 = shalt.err (!%p992_p3)
}
 0x127   : > { %836 = dma.vmem_to_hbm [thread:$0]  (%p1208_p13), %s658_s24, 64, %s1264_s13, %s642_s12  }
 0x128 PF: > { %p847_p5 = scmp.ge.s32.totalorder %s1090_s16, 2  ;;  %s669_s28 = sand.u32 1, %s1050_s6  }
 0x129   : > { %s670_s3 = scalar_lea.sflag [#allocation4], %s669_s28 }
 0x12a   : > { %p843_p7 = pnand %p847_p5, %p1215_p2 }
 0x12c   : > { %p844_p9 = pneg %p843_p7 }
 0x12e   : > { %1045 = dma.done.wait (%p844_p9), %s670_s3, 64  }
 0x12f   : > { %1047 = vsyncadd (%p844_p9), %s670_s3, 4294967232  ;;  %s17_s16 = sadd.s32 1, %s1090_s16   ;;  %s1331_s21 = sld [smem:[#allocation10_spill]] }
 0x130   : > { %p14_p10 = scmp.ge.s32.totalorder %s17_s16, 6   ;;  %s1332_s4 = sld [smem:[#allocation8_spill]] }
 0x131   : > { %s1333_s24 = sld [smem:[#allocation9_spill]]  ;;  %s1334_s6 = smov %s1054_s7 }
 0x132   : > { %s1335_s7 = smov %s1058_s8  ;;  %s1336_s8 = smov %s1206_s9 }
 0x133   : > { %s1337_s9 = smov %s1066_s10  ;;  %s1338_s10 = smov %s1070_s11 }
 0x134   : > { %s1340_s12 = smov %s1082_s14  ;;  %s1341_s13 = smov %s1086_s15 }
 0x135   : > { %s1339_s11 = smov %s1331_s21  ;;  %16 = sbr.rel (!%p14_p10) target bundleno = 9 (0x9), region = 70 }
 0x136   : > { %s1342_s14 = smov %s1332_s4 }
 0x137   : > { %s1343_s15 = smov %s1333_s24 }
 0x13a   :  { %675 = vsyncpa [#allocation3], 1 }
 0x13b   :  { %677 = vsyncpa [#allocation3 + $0x1], 1 }
 0x13c   :  { %678 = vsyncpa [#allocation4], 1 }
 0x13d   :  { %680 = vsyncpa [#allocation4 + $0x1], 1 }

</bundles_post_ra>
